<compile_context>
chip_gen: v7x
topology: tpu7x:2x2x1
jax: 0.10.0
libtpu: 0.0.40
codegen_flags: <defaults>
</compile_context>

<pallas_src>
import jax
import jax.numpy as jnp
from jax import lax
from jax.experimental import pallas as pl
from jax.experimental.pallas import tpu as pltpu

BN_EPS = 1e-5
LANES = 128


def _round_up(x, m):
    return (x + m - 1) // m * m


def _fused_gcn_kernel(adj_ref, x_ref, w0_ref, b0_ref, scale_ref, shift_ref,
                      wl_ref, bl_ref, o_ref):
    """Fused 2-layer GCN forward; all intermediates stay in VMEM / vregs.

    layer0 (nfeat->nhid, f_in<f_out):  h = (A @ X) @ W0 + b0   (aggregate-first)
    BatchNorm1d(eval, folded) + ReLU   (dropout = identity in eval)
    layer-1 (nhid->nclass, f_in>f_out): out = A @ (h @ Wl) + bl (transform-first)
    """
    adj = adj_ref[...]                                                  # (N, N) bf16

    # ----- layer 0: aggregate-first -----
    agg = jnp.dot(adj, x_ref[...], preferred_element_type=jnp.float32)  # (N, Fp) f32
    h = jnp.dot(agg.astype(jnp.bfloat16), w0_ref[...],
                preferred_element_type=jnp.float32) + b0_ref[...]       # (N, Fp) f32

    # ----- BatchNorm1d (running stats, folded to scale/shift) + ReLU -----
    h = jnp.maximum(h * scale_ref[...] + shift_ref[...], 0.0)
    # F.dropout in eval mode is the identity.
    # TODO(synk): training-mode dropout RNG cannot be matched bit-for-bit with torch.

    # ----- last layer: transform-first -----
    t = jnp.dot(h.astype(jnp.bfloat16), wl_ref[...],
                preferred_element_type=jnp.float32)                     # (N, Fp) f32
    o_ref[...] = jnp.dot(adj, t.astype(jnp.bfloat16),
                         preferred_element_type=jnp.float32) + bl_ref[...]


def glorot(key, f_in, f_out):
    # PyG glorot init for GCNConv.lin.weight, already transposed to (f_in, f_out).
    bound = jnp.sqrt(6.0 / (f_in + f_out))
    return jax.random.uniform(key, (f_in, f_out), jnp.float32, -bound, bound)


def init_params(key, nfeat, nhid, nclass):
    k0, k1 = jax.random.split(key)
    return {
        # gcn_layers[0]: nfeat -> nhid
        "w0": glorot(k0, nfeat, nhid),
        "b0": jnp.zeros((1, nhid), jnp.float32),
        # gcn_layers[-1]: nhid -> nclass
        "w_last": glorot(k1, nhid, nclass),
        "b_last": jnp.zeros((1, nclass), jnp.float32),
        # BatchNorm1d(nhid) defaults (weight=1, bias=0, running stats 0/1)
        "gamma0": jnp.ones((1, nhid), jnp.float32),
        "beta0": jnp.zeros((1, nhid), jnp.float32),
        "rm0": jnp.zeros((1, nhid), jnp.float32),
        "rv0": jnp.ones((1, nhid), jnp.float32),
    }


def gcn_forward(params, x, adj):
    n, nfeat = x.shape
    nhid = params["w0"].shape[1]
    nclass = params["w_last"].shape[1]
    fp = _round_up(max(nfeat, nhid, nclass, LANES), LANES)   # lane-dense feature width

    def pad_cols(a, width, value=0.0):
        return jnp.pad(a, ((0, 0), (0, width - a.shape[1])), constant_values=value)

    # Lane-dense, bf16 matmul operands; pad regions are exactly zero so the
    # padded output columns stay zero and can be sliced off afterwards.
    x_p = pad_cols(x, fp).astype(jnp.bfloat16)                          # (N, Fp)
    adj_b = adj.astype(jnp.bfloat16)                                    # exact (small ints)
    w0_p = jnp.zeros((fp, fp), jnp.bfloat16).at[:nfeat, :nhid].set(
        params["w0"].astype(jnp.bfloat16))
    wl_p = jnp.zeros((fp, fp), jnp.bfloat16).at[:nhid, :nclass].set(
        params["w_last"].astype(jnp.bfloat16))
    b0_p = pad_cols(params["b0"], fp)
    bl_p = pad_cols(params["b_last"], fp)

    # Fold eval-mode BatchNorm1d into per-channel scale/shift (identity in pad).
    scale = params["gamma0"] * lax.rsqrt(params["rv0"] + BN_EPS)
    shift = params["beta0"] - params["rm0"] * scale
    scale_p = pad_cols(scale, fp, value=1.0)
    shift_p = pad_cols(shift, fp, value=0.0)

    vmem = pl.BlockSpec(memory_space=pltpu.MemorySpace.VMEM)
    out_p = pl.pallas_call(
        _fused_gcn_kernel,
        out_shape=jax.ShapeDtypeStruct((n, fp), jnp.float32),
        in_specs=[vmem] * 8,
        out_specs=vmem,
    )(adj_b, x_p, w0_p, b0_p, scale_p, shift_p, wl_p, bl_p)

    return out_p[:, :nclass]


def gcn_forward_ref(params, x, adj):
    # Pure-JAX f32 reference (original GCNConv ordering A @ (X @ W^T) + b).
    h = adj @ (x @ params["w0"]) + params["b0"]
    inv = lax.rsqrt(params["rv0"] + BN_EPS)
    h = (h - params["rm0"]) * inv * params["gamma0"] + params["beta0"]
    h = jnp.maximum(h, 0.0)
    return adj @ (h @ params["w_last"]) + params["b_last"]


if __name__ == "__main__":
    NFEAT, NHID, NCLASS = 16, 32, 8
    N_NODES, N_EDGES = 64, 256

    key = jax.random.PRNGKey(0)
    k_x, k_e, k_p = jax.random.split(key, 3)

    x = jax.random.normal(k_x, (N_NODES, NFEAT), jnp.float32)
    edge_index = jax.random.randint(k_e, (2, N_EDGES), 0, N_NODES, jnp.int32)

    # Densify edge_index into adjacency: A[dst, src] += 1 (sum aggregation,
    # source_to_target flow, edge weight = 1, normalize=False).
    adj = jnp.zeros((N_NODES, N_NODES), jnp.float32).at[
        edge_index[1], edge_index[0]].add(1.0)

    params = init_params(k_p, NFEAT, NHID, NCLASS)

    out = gcn_forward(params, x, adj)
    jax.block_until_ready(out)

    assert out.shape == (N_NODES, NCLASS) and out.dtype == jnp.float32
    ref = gcn_forward_ref(params, x, adj)
    assert jnp.allclose(out, ref, rtol=1e-1, atol=1e-1), "mismatch vs f32 reference"
    print("KERNEL_OK")
</pallas_src>

<mosaic_0001>
module attributes {stable_mosaic.version = 11 : i64} {
  func.func @_fused_gcn_kernel(%arg0: memref<64x64xbf16, #tpu.memory_space<vmem>>, %arg1: memref<64x128xbf16, #tpu.memory_space<vmem>>, %arg2: memref<128x128xbf16, #tpu.memory_space<vmem>>, %arg3: memref<1x128xf32, #tpu.memory_space<vmem>>, %arg4: memref<1x128xf32, #tpu.memory_space<vmem>>, %arg5: memref<1x128xf32, #tpu.memory_space<vmem>>, %arg6: memref<128x128xbf16, #tpu.memory_space<vmem>>, %arg7: memref<1x128xf32, #tpu.memory_space<vmem>>, %arg8: memref<64x128xf32, #tpu.memory_space<vmem>>) attributes {dimension_semantics = [], scalar_prefetch = 0 : i64, scratch_operands = 0 : i64, tpu.core_type = #tpu.core_type<tc>} {
    %c0 = arith.constant 0 : index
    %c0_0 = arith.constant 0 : index
    %0 = vector.load %arg0[%c0, %c0_0] : memref<64x64xbf16, #tpu.memory_space<vmem>>, vector<64x64xbf16>
    %c0_1 = arith.constant 0 : index
    %c0_2 = arith.constant 0 : index
    %1 = vector.load %arg1[%c0_1, %c0_2] : memref<64x128xbf16, #tpu.memory_space<vmem>>, vector<64x128xbf16>
    %cst = arith.constant dense<0.000000e+00> : vector<64x128xf32>
    %2 = tpu.matmul %0, %1, %cst {dimension_numbers = #tpu.dot_dimension_numbers<[1], [0], [0], [1], [0, 0, 1, 1], [], []>} : vector<64x64xbf16>, vector<64x128xbf16>, vector<64x128xf32> -> vector<64x128xf32>
    %3 = arith.truncf %2 : vector<64x128xf32> to vector<64x128xbf16>
    %c0_3 = arith.constant 0 : index
    %c0_4 = arith.constant 0 : index
    %4 = vector.load %arg2[%c0_3, %c0_4] : memref<128x128xbf16, #tpu.memory_space<vmem>>, vector<128x128xbf16>
    %cst_5 = arith.constant dense<0.000000e+00> : vector<64x128xf32>
    %5 = tpu.matmul %3, %4, %cst_5 {dimension_numbers = #tpu.dot_dimension_numbers<[1], [0], [0], [1], [0, 0, 1, 1], [], []>} : vector<64x128xbf16>, vector<128x128xbf16>, vector<64x128xf32> -> vector<64x128xf32>
    %c0_6 = arith.constant 0 : index
    %c0_7 = arith.constant 0 : index
    %6 = vector.load %arg3[%c0_6, %c0_7] : memref<1x128xf32, #tpu.memory_space<vmem>>, vector<1x128xf32>
    %7 = vector.broadcast %6 : vector<1x128xf32> to vector<64x128xf32>
    %8 = arith.addf %5, %7 : vector<64x128xf32>
    %c0_8 = arith.constant 0 : index
    %c0_9 = arith.constant 0 : index
    %9 = vector.load %arg4[%c0_8, %c0_9] : memref<1x128xf32, #tpu.memory_space<vmem>>, vector<1x128xf32>
    %10 = vector.broadcast %9 : vector<1x128xf32> to vector<64x128xf32>
    %11 = arith.mulf %8, %10 : vector<64x128xf32>
    %c0_10 = arith.constant 0 : index
    %c0_11 = arith.constant 0 : index
    %12 = vector.load %arg5[%c0_10, %c0_11] : memref<1x128xf32, #tpu.memory_space<vmem>>, vector<1x128xf32>
    %13 = vector.broadcast %12 : vector<1x128xf32> to vector<64x128xf32>
    %14 = arith.addf %11, %13 : vector<64x128xf32>
    %cst_12 = arith.constant 0.000000e+00 : f32
    %15 = vector.broadcast %cst_12 : f32 to vector<64x128xf32>
    %16 = arith.maximumf %14, %15 : vector<64x128xf32>
    %17 = arith.truncf %16 : vector<64x128xf32> to vector<64x128xbf16>
    %c0_13 = arith.constant 0 : index
    %c0_14 = arith.constant 0 : index
    %18 = vector.load %arg6[%c0_13, %c0_14] : memref<128x128xbf16, #tpu.memory_space<vmem>>, vector<128x128xbf16>
    %cst_15 = arith.constant dense<0.000000e+00> : vector<64x128xf32>
    %19 = tpu.matmul %17, %18, %cst_15 {dimension_numbers = #tpu.dot_dimension_numbers<[1], [0], [0], [1], [0, 0, 1, 1], [], []>} : vector<64x128xbf16>, vector<128x128xbf16>, vector<64x128xf32> -> vector<64x128xf32>
    %20 = arith.truncf %19 : vector<64x128xf32> to vector<64x128xbf16>
    %cst_16 = arith.constant dense<0.000000e+00> : vector<64x128xf32>
    %21 = tpu.matmul %0, %20, %cst_16 {dimension_numbers = #tpu.dot_dimension_numbers<[1], [0], [0], [1], [0, 0, 1, 1], [], []>} : vector<64x64xbf16>, vector<64x128xbf16>, vector<64x128xf32> -> vector<64x128xf32>
    %c0_17 = arith.constant 0 : index
    %c0_18 = arith.constant 0 : index
    %22 = vector.load %arg7[%c0_17, %c0_18] : memref<1x128xf32, #tpu.memory_space<vmem>>, vector<1x128xf32>
    %23 = vector.broadcast %22 : vector<1x128xf32> to vector<64x128xf32>
    %24 = arith.addf %21, %23 : vector<64x128xf32>
    %c0_19 = arith.constant 0 : index
    %c0_20 = arith.constant 0 : index
    %25 = vector.load %arg8[%c0_19, %c0_20] : memref<64x128xf32, #tpu.memory_space<vmem>>, vector<64x128xf32>
    tpu.vector_store %arg8[%c0_19, %c0_20], %24 {strides = array<i32>} : memref<64x128xf32, #tpu.memory_space<vmem>>, vector<64x128xf32>,
    return
  }
}

</mosaic_0001>

<bundles_post_ra>
// kernel: tpu_custom_call.1
= control target key start
LH: loop header
LB: loop body
LE: loop exit
PB: predicated region body
PF: predicated region fallthrough
CT: control target
= control target key end

     0   :  { %13 = vsyncpa [#allocation3], 0  ;;  %s1121_s0 = inlined_call_operand.hbm [shape: bf16[64,64], index: 0, kind: input, shape index: {}]   ;;  %s1122_s1 = inlined_call_operand.hbm [shape: bf16[64,128], index: 1, kind: input, shape index: {}]   ;;  %s1123_s2 = inlined_call_operand.hbm [shape: bf16[128,128], index: 2, kind: input, shape index: {}]   ;;  %s1124_s3 = inlined_call_operand.vmem [shape: f32[1,128], index: 3, kind: input, shape index: {}]   ;;  %s1125_s4 = inlined_call_operand.vmem [shape: f32[1,128], index: 4, kind: input, shape index: {}]   ;;  %s1126_s5 = inlined_call_operand.vmem [shape: f32[1,128], index: 5, kind: input, shape index: {}]   ;;  %s1127_s6 = inlined_call_operand.hbm [shape: bf16[128,128], index: 6, kind: input, shape index: {}]   ;;  %s1128_s7 = inlined_call_operand.vmem [shape: f32[1,128], index: 7, kind: input, shape index: {}]   ;;  %s1129_s8 = inlined_call_operand.hbm [shape: f32[64,128], index: 8, kind: output, shape index: {}]  }
   0x1   :  { %14 = vsyncpa [#allocation6], 0 }
   0x2   :  { %15 = vsyncpa [#allocation9], 0 }
   0x3   :  { %16 = vsyncpa [#allocation4], 0  ;;  %s945_s27 = smov [#allocation5]   ;;  %s946_s29 = smov [#allocation2]  }
   0x4   :  { %s34_s28 = sshll.u32 %s945_s27, 4  ;;  %s22_s30 = sshll.u32 %s946_s29, 4  ;;  %s35_s28 = int_to_ptr.vmem [resolvable:$true] %s34_s28  ;;  %s999_s30 = int_to_ptr.vmem [resolvable:$true] %s22_s30 }
   0x5   :  { %s827_s11 = scalar_lea.hbm %s1122_s1, 512 }
   0x6   :  { %p828_p0 = scmp.ne.s32.totalorder %s1122_s1, %s827_s11  ;;  %p831_p1 = scmp.lt.u32.totalorder %s827_s11, %s1122_s1 }
   0x8   :  { %p833_p2 = pnand %p831_p1, %p828_p0 }
   0xa   :  { %836 = shalt.err (!%p833_p2)
}
   0xb   :  { %s837_s16 = scalar_lea.vmem %s35_s28, 512  ;;  %p842_p4 = scmp.lt.s32.totalorder %s35_s28, %s35_s28 }
   0xc   :  { %p838_p3 = scmp.ne.s32.totalorder %s35_s28, %s837_s16  ;;  %p843_p5 = scmp.lt.s32.totalorder %s837_s16, %s837_s16 }
   0xe   :  { %p844_p6 = por %p843_p5, %p842_p4 }
  0x10   :  { %p845_p7 = pnand %p844_p6, %p838_p3 }
  0x12   :  { %848 = shalt.err (!%p845_p7)
}
  0x13   :  { %s947_s17 = smov 64   ;;  %s948_s18 = smov 4  }
  0x14   :  { %40 = dma.hbm_to_vmem [thread:$0]  %s1122_s1, 512, %s35_s28, [#allocation6], %s947_s17, %s947_s17, %s948_s18  }
  0x15   :  { %s849_s23 = scalar_lea.hbm %s1121_s0, 512 }
  0x16   :  { %p850_p8 = scmp.ne.s32.totalorder %s1121_s0, %s849_s23  ;;  %p853_p9 = scmp.lt.u32.totalorder %s849_s23, %s1121_s0 }
  0x18   :  { %p855_p10 = pnand %p853_p9, %p850_p8 }
  0x1a   :  { %858 = shalt.err (!%p855_p10)
}
  0x1b   :  { %s859_s29 = scalar_lea.vmem %s999_s30, 512  ;;  %p864_p12 = scmp.lt.s32.totalorder %s999_s30, %s999_s30 }
  0x1c   :  { %p860_p11 = scmp.ne.s32.totalorder %s999_s30, %s859_s29  ;;  %p865_p13 = scmp.lt.s32.totalorder %s859_s29, %s859_s29 }
  0x1e   :  { %p866_p0 = por %p865_p13, %p864_p12 }
  0x20   :  { %p867_p1 = pnand %p866_p0, %p860_p11 }
  0x22   :  { %870 = shalt.err (!%p867_p1)
}
  0x23   :  { %28 = dma.hbm_to_vmem [thread:$0]  %s1121_s0, 512, %s999_s30, [#allocation3], %s947_s17, %s947_s17, %s948_s18  }
  0x24   :  { %s949_s9 = smov [#allocation7]   ;;  %s950_s11 = smov [#allocation8]  }
  0x25   :  { %s46_s10 = sshll.u32 %s949_s9, 4  ;;  %s64_s12 = sshll.u32 %s950_s11, 4  ;;  %s47_s10 = int_to_ptr.vmem [resolvable:$true] %s46_s10  ;;  %s1036_s12 = int_to_ptr.vmem [resolvable:$true] %s64_s12 }
  0x26   :  { %s871_s15 = scalar_lea.hbm %s1123_s2, 1024 }
  0x27   :  { %p872_p2 = scmp.ne.s32.totalorder %s1123_s2, %s871_s15  ;;  %p875_p3 = scmp.lt.u32.totalorder %s871_s15, %s1123_s2 }
  0x29   :  { %p877_p4 = pnand %p875_p3, %p872_p2 }
  0x2b   :  { %880 = shalt.err (!%p877_p4)
}
  0x2c   :  { %s881_s0 = scalar_lea.vmem %s47_s10, 1024  ;;  %p886_p6 = scmp.lt.s32.totalorder %s47_s10, %s47_s10 }
  0x2d   :  { %p882_p5 = scmp.ne.s32.totalorder %s47_s10, %s881_s0  ;;  %p887_p7 = scmp.lt.s32.totalorder %s881_s0, %s881_s0 }
  0x2f   :  { %p888_p8 = por %p887_p7, %p886_p6 }
  0x31   :  { %p889_p9 = pnand %p888_p8, %p882_p5 }
  0x33   :  { %892 = shalt.err (!%p889_p9)
}
  0x34   :  { %52 = dma.hbm_to_vmem [thread:$0]  %s1123_s2, 1024, %s47_s10, [#allocation6], %s947_s17, %s947_s17, %s948_s18  }
  0x35   :  { %s893_s25 = scalar_lea.hbm %s1127_s6, 1024 }
  0x36   :  { %p894_p10 = scmp.ne.s32.totalorder %s1127_s6, %s893_s25  ;;  %p897_p11 = scmp.lt.u32.totalorder %s893_s25, %s1127_s6 }
  0x38   :  { %p899_p12 = pnand %p897_p11, %p894_p10 }
  0x3a   :  { %902 = shalt.err (!%p899_p12)
}
  0x3b   :  { %s903_s28 = scalar_lea.vmem %s1036_s12, 1024  ;;  %p908_p0 = scmp.lt.s32.totalorder %s1036_s12, %s1036_s12 }
  0x3c   :  { %p904_p13 = scmp.ne.s32.totalorder %s1036_s12, %s903_s28  ;;  %p909_p1 = scmp.lt.s32.totalorder %s903_s28, %s903_s28 }
  0x3e   :  { %p910_p2 = por %p909_p1, %p908_p0 }
  0x40   :  { %p911_p3 = pnand %p910_p2, %p904_p13 }
  0x42   :  { %914 = shalt.err (!%p911_p3)
}
  0x43   :  { %70 = dma.hbm_to_vmem [thread:$0]  %s1127_s6, 1024, %s1036_s12, [#allocation9], %s947_s17, %s947_s17, %s948_s18  }
  0x44   :  { %937 = dma.done.wait [#allocation3], 512  }
  0x45   :  { %938 = vsyncadd [#allocation3], 4294966784 }
  0x46   :  { %939 = dma.done.wait [#allocation6], 1536  }
  0x47   :  { %940 = vsyncadd [#allocation6], 4294965760 }
  0x48   :  { %941 = dma.done.wait [#allocation9], 1024  }
  0x49   :  { %942 = vsyncadd [#allocation9], 4294966272  ;;  %v803_v0 = vld [vmem:[#allocation5] sm:$0xff]   ;;  %v804_v1 = vld [vmem:[#allocation5 + $0x8] sm:$0xff]   ;;  %vm146_vm0 = vcmask 523264  }
  0x4a   :  { %714 = vmatprep.subr.bf16.mxu0 %v803_v0  ;;  %v805_v2 = vld [vmem:[#allocation5 + $0x10] sm:$0xff]   ;;  %v1073_v3 = vld [vmem:[#allocation2] sm:$0xff]   ;;  %v806_v4 = vld [vmem:[#allocation5 + $0x18] sm:$0xff]  }
  0x4b   :  { %715 = vmatpush3.bf16.msra.mxu0 %v803_v0  ;;  %722 = vmatprep.mubr.msk.bf16.mxu0 %vm146_vm0, %v1073_v3  ;;  %v811_v5 = vld [vmem:[#allocation7] sm:$0xff]   ;;  %v812_v6 = vld [vmem:[#allocation7 + $0x8] sm:$0xff]   ;;  %v813_v8 = vld [vmem:[#allocation7 + $0x10] sm:$0xff]  }
  0x4c   :  { %716 = vmatprep.subr.bf16.mxu0 %v804_v1  ;;  %730 = vmatprep.subr.bf16.mxu1 %v811_v5  ;;  %v1077_v7 = vld [vmem:[#allocation2 + $0x8] sm:$0xff]   ;;  %v1079_v9 = vld [vmem:[#allocation2 + $0x10] sm:$0xff]   ;;  %v814_v10 = vld [vmem:[#allocation7 + $0x18] sm:$0xff]  }
  0x4d   :  { %731 = vmatpush3.bf16.msra.mxu1 %v811_v5  ;;  %v815_v11 = vld [vmem:[#allocation7 + $0x20] sm:$0xff]   ;;  %v1085_v12 = vld [vmem:[#allocation2 + $0x18] sm:$0xff]   ;;  %v816_v13 = vld [vmem:[#allocation7 + $0x28] sm:$0xff]  }
  0x4e   :  { %732 = vmatprep.subr.bf16.mxu1 %v812_v6  ;;  %v817_v14 = vld [vmem:[#allocation7 + $0x30] sm:$0xff]   ;;  %v818_v15 = vld [vmem:[#allocation7 + $0x38] sm:$0xff]   ;;  %v819_v16 = vld [vmem:[#allocation8] sm:$0xff]  }
  0x4f   :  { %717 = vmatpush3.bf16.msra.mxu0 %v804_v1  ;;  %v820_v17 = vld [vmem:[#allocation8 + $0x8] sm:$0xff]   ;;  %v821_v18 = vld [vmem:[#allocation8 + $0x10] sm:$0xff]   ;;  %v822_v19 = vld [vmem:[#allocation8 + $0x18] sm:$0xff]  }
  0x50   :  { %718 = vmatprep.subr.bf16.mxu0 %v805_v2  ;;  %v823_v20 = vld [vmem:[#allocation8 + $0x20] sm:$0xff]   ;;  %v824_v33 = vld [vmem:[#allocation8 + $0x28] sm:$0xff]   ;;  %v825_v34 = vld [vmem:[#allocation8 + $0x30] sm:$0xff]  }
  0x51   :  { %733 = vmatpush3.bf16.msra.mxu1 %v812_v6  ;;  %v826_v35 = vld [vmem:[#allocation8 + $0x38] sm:$0xff]   ;;  %v650_v36 = vld [vmem:[%s1124_s3] ss:$0 sm:$0xff] }
  0x52   :  { %734 = vmatprep.subr.bf16.mxu1 %v813_v8  ;;  %v659_v38 = vld [vmem:[%s1125_s4] ss:$0 sm:$0xff] }
  0x53   :  { %719 = vmatpush3.bf16.msra.mxu0 %v805_v2  ;;  %v660_v41 = vld [vmem:[%s1126_s5] ss:$0 sm:$0xff]  ;;  %s951_s5 = smov [#allocation10]  }
  0x54   :  { %720 = vmatprep.subr.bf16.mxu0 %v806_v4  ;;  %s624_s13 = sshll.u32 %s951_s5, 4  ;;  %s625_s13 = int_to_ptr.vmem [resolvable:$true] %s624_s13 }
  0x55   :  { %735 = vmatpush3.bf16.msra.mxu1 %v813_v8  ;;  %p920_p5 = scmp.lt.s32.totalorder %s625_s13, %s625_s13 }
  0x56   :  { %736 = vmatprep.subr.bf16.mxu1 %v814_v10 }
  0x57   :  { %721 = vmatpush3.bf16.msra.mxu0 %v806_v4 }
  0x58   :  { %754 = vmatprep.subr.bf16.mxu0 %v819_v16 }
  0x59   :  { %737 = vmatpush3.bf16.msra.mxu1 %v814_v10 }
  0x5a   :  { %723 = vmatmul.mubr.msk.bf16.vlgmr.msra.gmra.mrb[0].mxu0 %vm146_vm0, %v1077_v7  ;;  %738 = vmatprep.subr.bf16.mxu1 %v815_v11 }
  0x5b   :  { %726 = vmatprep.mubr.msk.bf16.mxu0 %vm146_vm0, %v1079_v9  ;;  %755 = vmatpush3.bf16.msra.mxu0 %v819_v16 }
  0x5c   :  { %756 = vmatprep.subr.bf16.mxu0 %v820_v17 }
  0x5d   :  { %739 = vmatpush3.bf16.msra.mxu1 %v815_v11 }
  0x5e   :  { %740 = vmatprep.subr.bf16.mxu1 %v816_v13 }
  0x5f   :  { %757 = vmatpush3.bf16.msra.mxu0 %v820_v17 }
  0x60   :  { %758 = vmatprep.subr.bf16.mxu0 %v821_v18 }
  0x61   :  { %741 = vmatpush3.bf16.msra.mxu1 %v816_v13 }
  0x62   :  { %727 = vmatmul.mubr.msk.bf16.gmra.mrb[4].mxu0 %vm146_vm0, %v1085_v12  ;;  %742 = vmatprep.subr.bf16.mxu1 %v817_v14 }
  0x63   :  { %759 = vmatpush3.bf16.msra.mxu0 %v821_v18 }
  0x64   :  { %760 = vmatprep.subr.bf16.mxu0 %v822_v19 }
  0x65   :  { %743 = vmatpush3.bf16.msra.mxu1 %v817_v14 }
  0x66   :  { %744 = vmatprep.subr.bf16.mxu1 %v818_v15 }
  0x67   :  { %761 = vmatpush3.bf16.msra.mxu0 %v822_v19 }
  0x68   :  { %762 = vmatprep.subr.bf16.mxu0 %v823_v20 }
  0x69   :  { %745 = vmatpush3.bf16.msra.mxu1 %v818_v15 }
  0x6b   :  { %763 = vmatpush3.bf16.msra.mxu0 %v823_v20 }
  0x6c   :  { %764 = vmatprep.subr.bf16.mxu0 %v824_v33 }
  0x6f   :  { %765 = vmatpush3.bf16.msra.mxu0 %v824_v33 }
  0x70   :  { %766 = vmatprep.subr.bf16.mxu0 %v825_v34 }
  0x73   :  { %767 = vmatpush3.bf16.msra.mxu0 %v825_v34  ;;  %v669_v34 = vld [vmem:[%s1128_s7] ss:$0 sm:$0xff]  ;;  %s915_s7 = scalar_lea.vmem %s625_s13, 1024 }
  0x74   :  { %768 = vmatprep.subr.bf16.mxu0 %v826_v35  ;;  %p916_p4 = scmp.ne.s32.totalorder %s625_s13, %s915_s7  ;;  %p921_p6 = scmp.lt.s32.totalorder %s915_s7, %s915_s7 }
  0x76   :  { %p922_p7 = por %p921_p6, %p920_p5 }
  0x77   :  { %769 = vmatpush3.bf16.msra.mxu0 %v826_v35 }
  0x78   :  { %p923_p8 = pnand %p922_p7, %p916_p4 }
 0x12d   :  { %v724_v21 = vpop.f32.mrb[0].mxu0 }
 0x12e   :  { %v193_v22 = vpop.f32.mrb[1].mxu0 }
 0x12f   :  { %v725_v23 = vpop.f32.mrb[2].mxu0 }
 0x130   :  { %v225_v24 = vpack.c.bf16 %v725_v23, %v724_v21  ;;  %v196_v25 = vpop.f32.mrb[3].mxu0 }
 0x131   :  { %v224_v26 = vpack.c.bf16 %v196_v25, %v193_v22 }
 0x133   :  { %746 = vmatprep.mubr.bf16.mxu1 %v224_v26 }
 0x134   :  { %747 = vmatmul.mubr.bf16.vlgmr.msra.gmra.mrb[0].mxu1 %v225_v24 }
 0x135   :  { %v728_v27 = vpop.f32.mrb[4].mxu0 }
 0x136   :  { %v209_v28 = vpop.f32.mrb[5].mxu0 }
 0x137   :  { %v729_v29 = vpop.f32.mrb[6].mxu0 }
 0x138   :  { %v227_v30 = vpack.c.bf16 %v729_v29, %v728_v27  ;;  %v212_v31 = vpop.f32.mrb[7].mxu0 }
 0x139   :  { %v226_v32 = vpack.c.bf16 %v212_v31, %v209_v28 }
 0x13b   :  { %750 = vmatprep.mubr.bf16.mxu1 %v226_v32 }
 0x13c   :  { %751 = vmatmul.mubr.bf16.gmra.mrb[4].mxu1 %v227_v30 }
 0x13d   :  { %786 = vmatprep.mubr.msk.bf16.mxu1 %vm146_vm0, %v1073_v3 }
 0x207   :  { %v748_v37 = vpop.f32.mrb[0].mxu1 }
 0x208   :  { %v342_v39 = vadd.f32 %v748_v37, %v650_v36  ;;  %v333_v40 = vpop.f32.mrb[1].mxu1 }
 0x209   :  { %v334_v42 = vadd.f32 %v650_v36, %v333_v40  ;;  %v749_v43 = vpop.f32.mrb[2].mxu1 }
 0x20a   :  { %v373_v44 = vmul.f32 %v659_v38, %v342_v39  ;;  %v345_v45 = vadd.f32 %v749_v43, %v650_v36  ;;  %v336_v46 = vpop.f32.mrb[3].mxu1 }
 0x20b   :  { %v371_v47 = vmul.f32 %v659_v38, %v334_v42  ;;  %v337_v48 = vadd.f32 %v650_v36, %v336_v46 }
 0x20c   :  { %v388_v49 = vadd.f32 %v660_v41, %v373_v44  ;;  %v374_v50 = vmul.f32 %v659_v38, %v345_v45 }
 0x20d   :  { %v386_v51 = vadd.f32 %v660_v41, %v371_v47  ;;  %v372_v52 = vmul.f32 %v659_v38, %v337_v48 }
 0x20e   :  { %v389_v53 = vadd.f32 %v660_v41, %v374_v50  ;;  %v396_v56 = vmax.f32 %v388_v49, 0.0 }
 0x20f   :  { %v387_v54 = vadd.f32 %v660_v41, %v372_v52  ;;  %v752_v55 = vpop.f32.mrb[4].mxu1  ;;  %v394_v60 = vmax.f32 %v386_v51, 0.0 }
 0x210   :  { %v397_v57 = vmax.f32 %v389_v53, 0.0  ;;  %v358_v58 = vadd.f32 %v752_v55, %v650_v36  ;;  %v349_v59 = vpop.f32.mrb[5].mxu1 }
 0x211   :  { %v395_v61 = vmax.f32 %v387_v54, 0.0  ;;  %v350_v62 = vadd.f32 %v650_v36, %v349_v59  ;;  %v753_v63 = vpop.f32.mrb[6].mxu1 }
 0x212   :  { %v403_v0 = vpack.c.bf16 %v397_v57, %v396_v56  ;;  %v377_v1 = vmul.f32 %v659_v38, %v358_v58  ;;  %v361_v2 = vadd.f32 %v753_v63, %v650_v36  ;;  %v352_v3 = vpop.f32.mrb[7].mxu1 }
 0x213   :  { %v375_v4 = vmul.f32 %v659_v38, %v350_v62  ;;  %v353_v5 = vadd.f32 %v650_v36, %v352_v3  ;;  %v402_v6 = vpack.c.bf16 %v395_v61, %v394_v60 }
 0x214   :  { %v392_v8 = vadd.f32 %v660_v41, %v377_v1  ;;  %v378_v10 = vmul.f32 %v659_v38, %v361_v2 }
 0x215   :  { %v390_v11 = vadd.f32 %v660_v41, %v375_v4  ;;  %v376_v13 = vmul.f32 %v659_v38, %v353_v5  ;;  %770 = vmatprep.mubr.bf16.mxu0 %v402_v6 }
 0x216   :  { %v393_v14 = vadd.f32 %v660_v41, %v378_v10  ;;  %771 = vmatmul.mubr.bf16.vlgmr.msra.gmra.mrb[8].mxu0 %v403_v0  ;;  %v400_v16 = vmax.f32 %v392_v8, 0.0 }
 0x217   :  { %v391_v15 = vadd.f32 %v660_v41, %v376_v13  ;;  %v398_v18 = vmax.f32 %v390_v11, 0.0 }
 0x218   :  { %v401_v17 = vmax.f32 %v393_v14, 0.0 }
 0x219   :  { %v399_v19 = vmax.f32 %v391_v15, 0.0 }
 0x21a   :  { %v405_v20 = vpack.c.bf16 %v401_v17, %v400_v16 }
 0x21b   :  { %v404_v21 = vpack.c.bf16 %v399_v19, %v398_v18 }
 0x21d   :  { %774 = vmatprep.mubr.bf16.mxu0 %v404_v21 }
 0x21e   :  { %775 = vmatmul.mubr.bf16.gmra.mrb[12].mxu0 %v405_v20 }
 0x2e9   :  { %v772_v22 = vpop.f32.mrb[8].mxu0 }
 0x2ea   :  { %v504_v23 = vpop.f32.mrb[9].mxu0 }
 0x2eb   :  { %v773_v24 = vpop.f32.mrb[10].mxu0 }
 0x2ec   :  { %v536_v25 = vpack.c.bf16 %v773_v24, %v772_v22  ;;  %v507_v26 = vpop.f32.mrb[11].mxu0 }
 0x2ed   :  { %v535_v27 = vpack.c.bf16 %v507_v26, %v504_v23 }
 0x2ef   :  { %778 = vmatprep.subr.bf16.mxu1 %v535_v27 }
 0x2f0   :  { %779 = vmatpush3.bf16.msra.mxu1 %v535_v27 }
 0x2f1   :  { %v776_v28 = vpop.f32.mrb[12].mxu0  ;;  %780 = vmatprep.subr.bf16.mxu1 %v536_v25 }
 0x2f2   :  { %v520_v29 = vpop.f32.mrb[13].mxu0 }
 0x2f3   :  { %v777_v30 = vpop.f32.mrb[14].mxu0 }
 0x2f4   :  { %v538_v31 = vpack.c.bf16 %v777_v30, %v776_v28  ;;  %v523_v32 = vpop.f32.mrb[15].mxu0  ;;  %781 = vmatpush3.bf16.msra.mxu1 %v536_v25 }
 0x2f5   :  { %v537_v33 = vpack.c.bf16 %v523_v32, %v520_v29 }
 0x2f7   :  { %782 = vmatprep.subr.bf16.mxu1 %v537_v33 }
 0x2f8   :  { %783 = vmatpush3.bf16.msra.mxu1 %v537_v33 }
 0x2f9   :  { %784 = vmatprep.subr.bf16.mxu1 %v538_v31 }
 0x2fc   :  { %785 = vmatpush3.bf16.msra.mxu1 %v538_v31 }
 0x2ff   :  { %787 = vmatmul.mubr.msk.bf16.vlgmr.msra.gmra.mrb[8].mxu1 %vm146_vm0, %v1077_v7 }
 0x300   :  { %790 = vmatprep.mubr.msk.bf16.mxu1 %vm146_vm0, %v1079_v9 }
 0x307   :  { %791 = vmatmul.mubr.msk.bf16.gmra.mrb[12].mxu1 %vm146_vm0, %v1085_v12 }
 0x3d2   :  { %v788_v35 = vpop.f32.mrb[8].mxu1 }
 0x3d3   :  { %v589_v36 = vadd.f32 %v788_v35, %v669_v34  ;;  %v580_v37 = vpop.f32.mrb[9].mxu1 }
 0x3d4   :  { %v581_v38 = vadd.f32 %v669_v34, %v580_v37  ;;  %v789_v39 = vpop.f32.mrb[10].mxu1 }
 0x3d5   :  { %613 = vst [vmem:[#allocation10 + $0x10] sm:$0xff] %v589_v36  ;;  %v592_v40 = vadd.f32 %v789_v39, %v669_v34  ;;  %v583_v41 = vpop.f32.mrb[11].mxu1 }
 0x3d6   :  { %611 = vst [vmem:[#allocation10] sm:$0xff] %v581_v38  ;;  %v584_v7 = vadd.f32 %v669_v34, %v583_v41 }
 0x3d7   :  { %614 = vst [vmem:[#allocation10 + $0x18] sm:$0xff] %v592_v40 }
 0x3d8   :  { %612 = vst [vmem:[#allocation10 + $0x8] sm:$0xff] %v584_v7 }
 0x3da   :  { %v792_v9 = vpop.f32.mrb[12].mxu1 }
 0x3db   :  { %v605_v12 = vadd.f32 %v792_v9, %v669_v34  ;;  %v596_v42 = vpop.f32.mrb[13].mxu1 }
 0x3dc   :  { %v597_v43 = vadd.f32 %v669_v34, %v596_v42  ;;  %v793_v44 = vpop.f32.mrb[14].mxu1 }
 0x3dd   :  { %617 = vst [vmem:[#allocation10 + $0x30] sm:$0xff] %v605_v12  ;;  %v608_v45 = vadd.f32 %v793_v44, %v669_v34  ;;  %v599_v46 = vpop.f32.mrb[15].mxu1 }
 0x3de   :  { %615 = vst [vmem:[#allocation10 + $0x20] sm:$0xff] %v597_v43  ;;  %v600_v47 = vadd.f32 %v669_v34, %v599_v46 }
 0x3df   :  { %618 = vst [vmem:[#allocation10 + $0x38] sm:$0xff] %v608_v45 }
 0x3e0   :  { %616 = vst [vmem:[#allocation10 + $0x28] sm:$0xff] %v600_v47 }
 0x3e1   :  { %926 = shalt.err (!%p923_p8)
}
 0x3e2   :  { %s927_s16 = scalar_lea.hbm %s1129_s8, 1024 }
 0x3e3   :  { %p928_p9 = scmp.ne.s32.totalorder %s1129_s8, %s927_s16  ;;  %p931_p10 = scmp.lt.u32.totalorder %s927_s16, %s1129_s8 }
 0x3e5   :  { %p933_p11 = pnand %p931_p10, %p928_p9 }
 0x3e7   :  { %936 = shalt.err (!%p933_p11)
}
 0x3e8   :  { %s952_s30 = smov 128   ;;  %s953_s22 = smov 8  }
 0x3e9   :  { %630 = dma.vmem_to_hbm [thread:$0]  %s625_s13, 1024, %s1129_s8, [#allocation4], %s952_s30, %s952_s30, %s953_s22  }
 0x3ea   :  { %943 = dma.done.wait [#allocation4], 1024  }
 0x3eb   :  { %944 = vsyncadd [#allocation4], 4294966272 }
 0x3ec   :  { %634 = vsyncpa [#allocation3], 1 }
 0x3ed   :  { %635 = vsyncpa [#allocation6], 1 }
 0x3ee   :  { %636 = vsyncpa [#allocation9], 1 }
 0x3ef   :  { %637 = vsyncpa [#allocation4], 1 }

</bundles_post_ra>
